<compile_context>
chip_gen: v6e
topology: v6e:2x2x1
jax: 0.10.0
libtpu: 0.0.40
codegen_flags: <defaults>
</compile_context>

<pallas_src>
import math

import jax
import jax.numpy as jnp
from jax.experimental import pallas as pl
from jax.experimental.pallas import tpu as pltpu

# ---- configuration (mirrors ModulateConvBlock.__init__ at small sizes) ----
B = 2          # batch
RES = 16       # resolution
C_IN = 4       # in_channels
C_OUT = 8      # out_channels
K = 3          # kernel_size
W_DIM = 32     # w_space_dim
EPS = 1e-8
LR_MULT = 1.0
W_SCALE = 1.0 / math.sqrt(C_IN * K * K)   # conv weight wscale (weight_gain=1)
STYLE_SCALE = 1.0 / math.sqrt(W_DIM)      # style DenseBlock wscale
ACT_SCALE = math.sqrt(2.0)                # lrelu gain
PAD = K // 2                              # "same" conv padding (scale_factor == 1)
KKC = K * K * C_IN                        # im2col depth (= 36)
HW = RES * RES                            # flattened spatial (= 256)
BKKC = B * KKC                            # 72
BCOUT = B * C_OUT                         # 16
AUG = W_DIM + 1                           # 33 (latent + ones column)

# TODO(synk): scale_factor > 1 path (conv_transpose2d + UpsamplingLayer blur) is not
# implemented; this kernel covers the scale_factor == 1 branch.


# -------------------- fused style + modulated conv kernel (single invocation) --------------------
def _mod_conv_kernel(lat_ref, sw_ref, wbd_ref, x_ref, bn_ref, o_ref):
    # lat_ref: (1, B*AUG)        all samples' [latent, 1] rows, flattened
    # sw_ref:  (B*AUG, B*KKC)    block-diag augmented style weight, already K*K lane-tiled
    # wbd_ref: (B*C_OUT, B*KKC)  block-diag wscaled base conv weight
    # x_ref:   (B*KKC, HW)       im2col patches, row index = b*KKC + (ky*K+kx)*C_IN + ci
    # bn_ref:  (B*C_OUT, HW)     bias + noise*strength, precomputed in wrapper
    # o_ref:   (B*C_OUT, HW)     lane-dense output

    # ---- fused style DenseBlock for ALL samples in one tiny dot ----
    # style_cols[0, KKC*b + idx] = (lat_b @ style_w)*STYLE_SCALE + style_b + 1, at channel idx % C_IN
    style_cols = jnp.dot(lat_ref[...], sw_ref[...],
                         preferred_element_type=jnp.float32)          # (1, B*KKC)

    # ---- modulate + demodulate (off-diagonal blocks are exact zeros,
    #      so the full-row sum of squares equals the per-sample sum) ----
    w_mod = wbd_ref[...] * style_cols                                 # (B*C_OUT, B*KKC)
    sumsq = jnp.sum(w_mod * w_mod, axis=1, keepdims=True)             # (B*C_OUT, 1)
    w_mod = w_mod * jax.lax.rsqrt(sumsq + EPS)                        # EUP rsqrt

    # ---- conv for the whole batch as ONE block-diagonal matmul ----
    y = jnp.dot(w_mod, x_ref[...], preferred_element_type=jnp.float32)  # (B*C_OUT, HW)

    y = y + bn_ref[...]                                               # bias + noise*strength
    y = jnp.where(y >= 0.0, y, 0.2 * y) * ACT_SCALE                   # lrelu * sqrt(2)
    o_ref[...] = y.astype(o_ref.dtype)


@jax.jit
def modulate_conv_block(x_nchw, w_lat, params):
    """Forward pass. x_nchw: (B, C_IN, RES, RES), w_lat: (B, W_DIM) -> (B, C_OUT, RES, RES)."""
    f32 = jnp.float32
    eye_b = jnp.eye(B, dtype=f32)

    # --- im2col patches for all samples, stacked along the contraction axis ---
    xp = jnp.pad(x_nchw.astype(f32), ((0, 0), (0, 0), (PAD, PAD), (PAD, PAD)))   # (B, C_IN, 18, 18)
    patches = jnp.stack(
        [xp[:, :, ky:ky + RES, kx:kx + RES] for ky in range(K) for kx in range(K)],
        axis=1,
    ).reshape(BKKC, HW)                                        # row = b*KKC + (ky*K+kx)*C_IN + ci

    # --- block-diagonal wscaled base conv weight: (B*C_OUT, B*KKC) ---
    w2d = jnp.transpose(params["conv_w"].astype(f32) * (W_SCALE * LR_MULT),
                        (3, 0, 1, 2)).reshape(C_OUT, KKC)      # (C_OUT, 36), ci fastest
    w_bd = jnp.kron(eye_b, w2d)                                # (16, 72)

    # --- augmented style affine, K*K lane-tiled, block-diag over batch ---
    # style = (lat @ style_w)*STYLE_SCALE + style_b*LR_MULT + init_bias(=1), linear activation
    aug_w = jnp.concatenate(
        [params["style_w"].astype(f32) * STYLE_SCALE,
         params["style_b"].astype(f32) * LR_MULT + 1.0], axis=0)      # (AUG, C_IN)
    aug_w_tiled = jnp.tile(aug_w, (1, K * K))                         # (AUG, KKC)
    sw_big = jnp.kron(eye_b, aug_w_tiled)                             # (B*AUG, B*KKC) = (66, 72)

    lat_wide = jnp.concatenate(
        [w_lat.astype(f32), jnp.ones((B, 1), f32)], axis=1).reshape(1, B * AUG)   # (1, 66)

    # --- fold conv bias + noise*strength into one lane-dense operand ---
    bias_noise = (params["bias"].astype(f32) * LR_MULT).reshape(C_OUT, 1) \
        + params["noise"].astype(f32).reshape(1, HW) * params["noise_strength"].astype(f32)
    bias_noise = jnp.tile(bias_noise, (B, 1))                         # (B*C_OUT, HW)

    vmem_specs = [pl.BlockSpec(memory_space=pltpu.MemorySpace.VMEM) for _ in range(5)]
    out = pl.pallas_call(
        _mod_conv_kernel,
        out_shape=jax.ShapeDtypeStruct((BCOUT, HW), jnp.float32),
        in_specs=vmem_specs,
        out_specs=pl.BlockSpec(memory_space=pltpu.MemorySpace.VMEM),
    )(lat_wide, sw_big, w_bd, patches, bias_noise)

    return out.reshape(B, C_OUT, RES, RES)   # row order is (b, c_out); no transpose needed


# -------------------- pure-JAX reference (mirrors the PyTorch code) --------------------
def reference(x_nchw, w_lat, params):
    weight = params["conv_w"] * W_SCALE * LR_MULT                        # (K,K,Cin,Cout)
    style = (w_lat @ params["style_w"]) * STYLE_SCALE + params["style_b"] * LR_MULT + 1.0
    _w = weight[None] * style[:, None, None, :, None]                    # (B,K,K,Cin,Cout)
    norm = jnp.sqrt(jnp.sum(_w ** 2, axis=(1, 2, 3)) + EPS)              # (B,Cout)
    _w = _w / norm[:, None, None, None, :]
    outs = []
    for b in range(B):
        wb = jnp.transpose(_w[b], (3, 2, 0, 1))                          # OIHW
        yb = jax.lax.conv_general_dilated(
            x_nchw[b:b + 1], wb, (1, 1), [(PAD, PAD), (PAD, PAD)],
            dimension_numbers=("NCHW", "OIHW", "NCHW"))
        outs.append(yb)
    y = jnp.concatenate(outs, axis=0)
    y = y + params["noise"][None, None, :, :] * params["noise_strength"]
    y = y + (params["bias"] * LR_MULT)[None, :, None, None]
    y = jnp.where(y >= 0.0, y, 0.2 * y) * ACT_SCALE
    return y


if __name__ == "__main__":
    key = jax.random.PRNGKey(0)
    ks = jax.random.split(key, 7)
    x = jax.random.normal(ks[0], (B, C_IN, RES, RES), jnp.float32)
    w_lat = jax.random.normal(ks[1], (B, W_DIM), jnp.float32)
    params = {
        "conv_w": jax.random.normal(ks[2], (K, K, C_IN, C_OUT), jnp.float32),
        "style_w": jax.random.normal(ks[3], (W_DIM, C_IN), jnp.float32),
        "style_b": 0.1 * jax.random.normal(ks[4], (1, C_IN), jnp.float32),
        "bias": 0.1 * jax.random.normal(ks[5], (C_OUT,), jnp.float32),
        "noise": jax.random.normal(ks[6], (RES, RES), jnp.float32),
        "noise_strength": jnp.float32(0.05),
    }

    out = modulate_conv_block(x, w_lat, params)
    out = jax.block_until_ready(out)

    ref = reference(x, w_lat, params)
    assert out.shape == (B, C_OUT, RES, RES), out.shape
    assert jnp.allclose(out, ref, atol=1e-4, rtol=1e-4), float(jnp.max(jnp.abs(out - ref)))
    print("KERNEL_OK")
</pallas_src>

<mosaic_0001>
module attributes {stable_mosaic.version = 11 : i64} {
  func.func @_mod_conv_kernel(%arg0: memref<1x66xf32, #tpu.memory_space<vmem>>, %arg1: memref<66x72xf32, #tpu.memory_space<vmem>>, %arg2: memref<16x72xf32, #tpu.memory_space<vmem>>, %arg3: memref<72x256xf32, #tpu.memory_space<vmem>>, %arg4: memref<16x256xf32, #tpu.memory_space<vmem>>, %arg5: memref<16x256xf32, #tpu.memory_space<vmem>>) attributes {dimension_semantics = [], scalar_prefetch = 0 : i64, scratch_operands = 0 : i64, tpu.core_type = #tpu.core_type<tc>} {
    %c0 = arith.constant 0 : index
    %c0_0 = arith.constant 0 : index
    %0 = vector.load %arg0[%c0, %c0_0] : memref<1x66xf32, #tpu.memory_space<vmem>>, vector<1x66xf32>
    %c0_1 = arith.constant 0 : index
    %c0_2 = arith.constant 0 : index
    %1 = vector.load %arg1[%c0_1, %c0_2] : memref<66x72xf32, #tpu.memory_space<vmem>>, vector<66x72xf32>
    %cst = arith.constant dense<0.000000e+00> : vector<1x72xf32>
    %2 = tpu.matmul %0, %1, %cst {dimension_numbers = #tpu.dot_dimension_numbers<[1], [0], [0], [1], [0, 0, 1, 1], [], []>} : vector<1x66xf32>, vector<66x72xf32>, vector<1x72xf32> -> vector<1x72xf32>
    %c0_3 = arith.constant 0 : index
    %c0_4 = arith.constant 0 : index
    %3 = vector.load %arg2[%c0_3, %c0_4] : memref<16x72xf32, #tpu.memory_space<vmem>>, vector<16x72xf32>
    %4 = vector.broadcast %2 : vector<1x72xf32> to vector<16x72xf32>
    %5 = arith.mulf %3, %4 : vector<16x72xf32>
    %6 = arith.mulf %5, %5 : vector<16x72xf32>
    %cst_5 = arith.constant dense<0.000000e+00> : vector<16xf32>
    %7 = vector.multi_reduction <add>, %6, %cst_5 [1] : vector<16x72xf32> to vector<16xf32>
    %8 = vector.shape_cast %7 : vector<16xf32> to vector<16x1xf32>
    %cst_6 = arith.constant 9.99999993E-9 : f32
    %9 = vector.broadcast %cst_6 : f32 to vector<16x1xf32>
    %10 = arith.addf %8, %9 : vector<16x1xf32>
    %11 = math.rsqrt %10 : vector<16x1xf32>
    %12 = vector.broadcast %11 : vector<16x1xf32> to vector<16x72xf32>
    %13 = arith.mulf %5, %12 : vector<16x72xf32>
    %c0_7 = arith.constant 0 : index
    %c0_8 = arith.constant 0 : index
    %14 = vector.load %arg3[%c0_7, %c0_8] : memref<72x256xf32, #tpu.memory_space<vmem>>, vector<72x256xf32>
    %cst_9 = arith.constant dense<0.000000e+00> : vector<16x256xf32>
    %15 = tpu.matmul %13, %14, %cst_9 {dimension_numbers = #tpu.dot_dimension_numbers<[1], [0], [0], [1], [0, 0, 1, 1], [], []>} : vector<16x72xf32>, vector<72x256xf32>, vector<16x256xf32> -> vector<16x256xf32>
    %c0_10 = arith.constant 0 : index
    %c0_11 = arith.constant 0 : index
    %16 = vector.load %arg4[%c0_10, %c0_11] : memref<16x256xf32, #tpu.memory_space<vmem>>, vector<16x256xf32>
    %17 = arith.addf %15, %16 : vector<16x256xf32>
    %cst_12 = arith.constant 0.000000e+00 : f32
    %18 = vector.broadcast %cst_12 : f32 to vector<16x256xf32>
    %19 = arith.cmpf oge, %17, %18 : vector<16x256xf32>
    %cst_13 = arith.constant 2.000000e-01 : f32
    %20 = vector.broadcast %cst_13 : f32 to vector<16x256xf32>
    %21 = arith.mulf %20, %17 : vector<16x256xf32>
    %22 = arith.select %19, %17, %21 : vector<16x256xi1>, vector<16x256xf32>
    %cst_14 = arith.constant 1.41421354 : f32
    %23 = vector.broadcast %cst_14 : f32 to vector<16x256xf32>
    %24 = arith.mulf %22, %23 : vector<16x256xf32>
    %c0_15 = arith.constant 0 : index
    %c0_16 = arith.constant 0 : index
    %25 = vector.load %arg5[%c0_15, %c0_16] : memref<16x256xf32, #tpu.memory_space<vmem>>, vector<16x256xf32>
    tpu.vector_store %arg5[%c0_15, %c0_16], %24 {strides = array<i32>} : memref<16x256xf32, #tpu.memory_space<vmem>>, vector<16x256xf32>,
    return
  }
}

</mosaic_0001>

<bundles_post_ra>
// kernel: mul.18
= control target key start
LH: loop header
LB: loop body
LE: loop exit
PB: predicated region body
PF: predicated region fallthrough
CT: control target
= control target key end

     0   :  { %vm47_vm0 = vcmask 64512   ;;  %s185_s0 = inlined_call_operand.vmem [shape: f32[8,3,3,4], index: 0, kind: input, shape index: {}]   ;;  %s186_s1 = inlined_call_operand.vmem [shape: f32[8,36], index: 1, kind: output, shape index: {}]  }
   0x1   :  { %v96_v0 = vld [vmem:[%s185_s0 + $0x20] sm:$0xf]  ;;  %v97_v1 = vld [vmem:[%s185_s0 + $0x1c] sm:$0xf]  ;;  %v98_v2 = vld [vmem:[%s185_s0 + $0x18] sm:$0xf] }
   0x2   :  { %9 = vst [vmem:[#allocation0 + $0x10] sm:$0xf] %v96_v0  ;;  %14 = vst [vmem:[#allocation0 + $0x40] sm:$0xf] %v97_v1  ;;  %v99_v3 = vld [vmem:[%s185_s0 + $0x14] sm:$0xf] }
   0x3   :  { %19 = vst [vmem:[#allocation0 + $0x28] sm:$0xf] %v98_v2  ;;  %v100_v4 = vld [vmem:[%s185_s0 + $0x10] sm:$0xf]  ;;  %v101_v5 = vld [vmem:[%s185_s0 + $0xc] sm:$0xf] }
   0x4   :  { %24 = vst [vmem:[#allocation0 + $0x30] sm:$0xf] %v99_v3  ;;  %29 = vst [vmem:[#allocation0 + $0x20] sm:$0xf] %v100_v4  ;;  %v102_v6 = vld [vmem:[%s185_s0 + $0x8] sm:$0xf] }
   0x5   :  { %34 = vst [vmem:[#allocation0 + $0x18] sm:$0xf] %v101_v5  ;;  %v103_v7 = vld [vmem:[%s185_s0 + $0x4] sm:$0xf]  ;;  %v44_v8 = vld [vmem:[%s185_s0] sm:$0xf] }
   0x6   :  { %39 = vst [vmem:[#allocation0] sm:$0xf] %v102_v6  ;;  %43 = vst [vmem:[#allocation0 + $0x8] sm:$0xf] %v103_v7 }
   0x7   :  { %45 = vst [vmem:[#allocation0 + $0x38] sm:$0xf] %v44_v8 }
   0x9   :  { %v80_v10 = vld [vmem:[#allocation0 + $0x40] sm:$0xf]   ;;  %v85_v11 = vld [vmem:[#allocation0 + $0x10] sm:$0xf]  }
   0xa   :  { %v75_v9 = vld [vmem:[#allocation0 + $0x28] sm:$0xf]   ;;  %110 = vst.msk [vmem:[%s186_s1 + $0x1c] sm:$0xf] %vm47_vm0, %v80_v10   ;;  %111 = vst.msk [vmem:[%s186_s1 + $0x20] sm:$0xf] %vm47_vm0, %v85_v11  }
   0xb   :  { %v65_v13 = vld [vmem:[#allocation0 + $0x20] sm:$0xf]   ;;  %v70_v14 = vld [vmem:[#allocation0 + $0x30] sm:$0xf]   ;;  %109 = vst.msk [vmem:[%s186_s1 + $0x18] sm:$0xf] %vm47_vm0, %v75_v9  }
   0xc   :  { %v60_v12 = vld [vmem:[#allocation0 + $0x18] sm:$0xf]   ;;  %107 = vst.msk [vmem:[%s186_s1 + $0x10] sm:$0xf] %vm47_vm0, %v65_v13   ;;  %108 = vst.msk [vmem:[%s186_s1 + $0x14] sm:$0xf] %vm47_vm0, %v70_v14  }
   0xd   :  { %v50_v16 = vld [vmem:[#allocation0 + $0x8] sm:$0xf]   ;;  %v55_v17 = vld [vmem:[#allocation0] sm:$0xf]   ;;  %106 = vst.msk [vmem:[%s186_s1 + $0xc] sm:$0xf] %vm47_vm0, %v60_v12  }
   0xe   :  { %v46_v15 = vld [vmem:[#allocation0 + $0x38] sm:$0xf]   ;;  %104 = vst.msk [vmem:[%s186_s1 + $0x4] sm:$0xf] %vm47_vm0, %v50_v16   ;;  %105 = vst.msk [vmem:[%s186_s1 + $0x8] sm:$0xf] %vm47_vm0, %v55_v17  }
   0xf   :  { %48 = vst.msk [vmem:[%s186_s1] sm:$0xf] %vm47_vm0, %v46_v15  }

// kernel: modulate_conv_block.1
= control target key start
LH: loop header
LB: loop body
LE: loop exit
PB: predicated region body
PF: predicated region fallthrough
CT: control target
= control target key end

     0   :  { %vm34_vm0 = vcmask 1041408   ;;  %v301_v0 = vmov 0.0   ;;  %vm302_vm1 = vmmov 0   ;;  %vm30_vm2 = vcmask 539648   ;;  %s463_s1 = inlined_call_operand.vmem [shape: f32[66,72], index: 1, kind: input, shape index: {}]   ;;  %s464_s0 = inlined_call_operand.vmem [shape: f32[1,66], index: 0, kind: input, shape index: {}]   ;;  %s465_s2 = inlined_call_operand.vmem [shape: f32[16,72], index: 2, kind: input, shape index: {}]   ;;  %s466_s3 = inlined_call_operand.vmem [shape: f32[72,256], index: 3, kind: input, shape index: {}]   ;;  %s467_s4 = inlined_call_operand.vmem [shape: f32[16,256], index: 4, kind: input, shape index: {}]   ;;  %s468_s5 = inlined_call_operand.vmem [shape: f32[16,256], index: 5, kind: output, shape index: {}]  }
   0x1   :  { %274 = vmatprep.subr.mxu0 %v301_v0  ;;  %v29_v1 = vld [vmem:[%s463_s1 + $0x40] sm:$0x3]  ;;  %v28_v2 = vld [vmem:[%s463_s1 + $0x38] sm:$0xff]  ;;  %292 = vmatprep.mubr.msk.f32.mxu0 %vm302_vm1, %v301_v0  ;;  %v27_v3 = vld [vmem:[%s463_s1 + $0x30] sm:$0xff]  ;;  %v110_v11 = vlaneseq  ;;  %vm118_vm3 = vcmask 588800  }
   0x2   :  { %275 = vmatpush3.msk.msra.mxu0 %vm34_vm0, %v29_v1  ;;  %223 = vmatprep.mubr.f32.mxu1 %v301_v0  ;;  %v26_v4 = vld [vmem:[%s463_s1 + $0x28] sm:$0xff]  ;;  %v25_v5 = vld [vmem:[%s463_s1 + $0x20] sm:$0xff]  ;;  %v24_v6 = vld [vmem:[%s463_s1 + $0x18] sm:$0xff] }
   0x3   :  { %276 = vmatprep.subr.mxu0 %v301_v0  ;;  %v23_v7 = vld [vmem:[%s463_s1 + $0x10] sm:$0xff]  ;;  %v22_v8 = vld [vmem:[%s463_s1 + $0x8] sm:$0xff]  ;;  %v21_v9 = vld [vmem:[%s463_s1] sm:$0xff]  ;;  %v111_v12 = vshrl.u32 %v110_v11, 7 }
   0x4   :  { %277 = vmatpush3.msra.mxu0 %v28_v2  ;;  %v20_v10 = vld [vmem:[%s464_s0] sm:$0x1]  ;;  %v109_v16 = vld [vmem:[%s465_s2 + $0x8] sm:$0xff]  ;;  %v146_v27 = vld [vmem:[%s466_s3 + $0x78] sm:$0xff] }
   0x5   :  { %278 = vmatprep.subr.mxu0 %v301_v0  ;;  %v112_v13 = vsub.s32 0, %v111_v12  ;;  %v108_v15 = vld [vmem:[%s465_s2] sm:$0xff]  ;;  %v148_v25 = vld [vmem:[%s466_s3 + $0x88] sm:$0xff]  ;;  %v145_v28 = vld [vmem:[%s466_s3 + $0x70] sm:$0xff] }
   0x6   :  { %279 = vmatpush3.msra.mxu0 %v27_v3  ;;  %173 = vmatprep.subr.mxu1 %v148_v25  ;;  %v147_v26 = vld [vmem:[%s466_s3 + $0x80] sm:$0xff]  ;;  %v144_v29 = vld [vmem:[%s466_s3 + $0x68] sm:$0xff]  ;;  %v142_v31 = vld [vmem:[%s466_s3 + $0x58] sm:$0xff] }
   0x7   :  { %280 = vmatprep.subr.mxu0 %v301_v0  ;;  %174 = vmatpush1.msra.mxu1 %v147_v26  ;;  %v143_v30 = vld [vmem:[%s466_s3 + $0x60] sm:$0xff]  ;;  %v141_v32 = vld [vmem:[%s466_s3 + $0x50] sm:$0xff]  ;;  %v140_v33 = vld [vmem:[%s466_s3 + $0x48] sm:$0xff] }
   0x8   :  { %281 = vmatpush3.msra.mxu0 %v26_v4  ;;  %175 = vmatprep.subr.mxu1 %v146_v27  ;;  %v139_v34 = vld [vmem:[%s466_s3 + $0x40] sm:$0xff]  ;;  %v138_v35 = vld [vmem:[%s466_s3 + $0x38] sm:$0xff]  ;;  %v137_v36 = vld [vmem:[%s466_s3 + $0x30] sm:$0xff] }
   0x9   :  { %282 = vmatprep.subr.mxu0 %v301_v0  ;;  %176 = vmatpush1.msra.mxu1 %v145_v28  ;;  %v136_v37 = vld [vmem:[%s466_s3 + $0x28] sm:$0xff]  ;;  %v135_v38 = vld [vmem:[%s466_s3 + $0x20] sm:$0xff]  ;;  %v134_v39 = vld [vmem:[%s466_s3 + $0x18] sm:$0xff] }
   0xa   :  { %283 = vmatpush3.msra.mxu0 %v25_v5  ;;  %177 = vmatprep.subr.mxu1 %v144_v29  ;;  %v133_v40 = vld [vmem:[%s466_s3 + $0x10] sm:$0xff]  ;;  %v132_v41 = vld [vmem:[%s466_s3 + $0x8] sm:$0xff]  ;;  %v131_v42 = vld [vmem:[%s466_s3] sm:$0xff] }
   0xb   :  { %284 = vmatprep.subr.mxu0 %v301_v0  ;;  %178 = vmatpush1.msra.mxu1 %v143_v30  ;;  %v149_v51 = vld [vmem:[%s467_s4] sm:$0xff]  ;;  %v150_v53 = vld [vmem:[%s467_s4 + $0x8] sm:$0xff]  ;;  %v151_v56 = vld [vmem:[%s467_s4 + $0x10] sm:$0xff] }
   0xc   :  { %285 = vmatpush3.msra.mxu0 %v24_v6  ;;  %179 = vmatprep.subr.mxu1 %v142_v31  ;;  %v152_v60 = vld [vmem:[%s467_s4 + $0x18] sm:$0xff] }
   0xd   :  { %286 = vmatprep.subr.mxu0 %v301_v0  ;;  %180 = vmatpush1.msra.mxu1 %v141_v32 }
   0xe   :  { %287 = vmatpush3.msra.mxu0 %v23_v7  ;;  %181 = vmatprep.subr.mxu1 %v140_v33 }
   0xf   :  { %288 = vmatprep.subr.mxu0 %v301_v0  ;;  %182 = vmatpush1.msra.mxu1 %v139_v34 }
  0x10   :  { %289 = vmatpush3.msra.mxu0 %v22_v8  ;;  %183 = vmatprep.subr.mxu1 %v138_v35 }
  0x11   :  { %290 = vmatprep.subr.mxu0 %v301_v0  ;;  %184 = vmatpush1.msra.mxu1 %v137_v36 }
  0x12   :  { %291 = vmatpush3.msra.mxu0 %v21_v9  ;;  %185 = vmatprep.subr.mxu1 %v136_v37 }
  0x13   :  { %293 = vmatmul.mubr.msk.f32.vlgmr.msra.gmra.mxu0 %vm30_vm2, %v20_v10  ;;  %186 = vmatpush1.msra.mxu1 %v135_v38 }
  0x14   :  { %187 = vmatprep.subr.mxu1 %v134_v39 }
  0x15   :  { %188 = vmatpush1.msra.mxu1 %v133_v40 }
  0x16   :  { %189 = vmatprep.subr.mxu1 %v132_v41 }
  0x17   :  { %190 = vmatpush1.msra.mxu1 %v131_v42 }
  0xd3   :  { %v104_v14 = vpop.f32.mrf.mxu0 }
  0xd4   :  { %v113_v17 = vrot.slane %v104_v14, %v112_v13 }
  0xd5   :  { %v294_v18 = vpop.f32.mrf.mxu0 }
  0xd6   :  { %v114_v19 = vmul.f32 %v113_v17, %v108_v15  ;;  %v115_v20 = vmul.f32 %v113_v17, %v109_v16 }
  0xd8   :  { %v116_v21 = vmul.f32 %v114_v19, %v114_v19  ;;  %v117_v23 = vmul.f32 %v115_v20, %v115_v20 }
  0xda   :  { %v119_v22 = vsel %vm118_vm3, %v116_v21, 0.0  ;;  %v122_v24 = vsel %vm118_vm3, %v117_v23, 0.0 }
  0xdb   :  { %120 = vadd.xlane.f32.xlu0 %v119_v22 }
  0xdf   :  { %123 = vadd.xlane.f32.xlu0 %v122_v24 }
 0x164   :  { %v121_v43 = vpop.xlane.xlu0 %120 }
 0x165   :  { %v125_v44 = vadd.f32 1e-08, %v121_v43 }
 0x167   :  { %297 = vrsqrt.f32 %v125_v44 }
 0x168   :  { %v124_v45 = vpop.xlane.xlu0 %123 }
 0x169   :  { %v126_v46 = vadd.f32 1e-08, %v124_v45 }
 0x16b   :  { %299 = vrsqrt.f32 %v126_v46 }
 0x174   :  { %v298_v47 = vpop.eup %297 }
 0x175   :  { %v129_v48 = vmul.f32 %v298_v47, %v114_v19 }
 0x177   :  { %262 = vmatmul.mubr.msk.f32.vlgmr.msra.gmra.mxu1 %vm118_vm3, %v129_v48 }
 0x178   :  { %v300_v49 = vpop.eup %299  ;;  %229 = vmatprep.mubr.f32.mxu1 %v301_v0 }
 0x179   :  { %v130_v50 = vmul.f32 %v300_v49, %v115_v20 }
 0x17b   :  { %263 = vmatmul.mubr.msk.f32.gmra.mxu1 %vm118_vm3, %v130_v50 }
 0x237   :  { %v225_v52 = vpop.f32.mrf.mxu1 }
 0x238   :  { %v226_v54 = vadd.f32 %v225_v52, %v149_v51 }
 0x239   :  { %v227_v55 = vpop.f32.mrf.mxu1 }
 0x23a   :  { %vm236_vm4 = vcmp.ge.f32.partialorder %v226_v54, 0.0  ;;  %v240_v57 = vmul.f32 0.2, %v226_v54  ;;  %v228_v58 = vadd.f32 %v227_v55, %v150_v53 }
 0x23b   :  { %v231_v59 = vpop.f32.mrf.mxu1 }
 0x23c   :  { %v244_v61 = vsel %vm236_vm4, %v226_v54, %v240_v57  ;;  %vm237_vm5 = vcmp.ge.f32.partialorder %v228_v58, 0.0  ;;  %v241_v62 = vmul.f32 0.2, %v228_v58  ;;  %v232_v63 = vadd.f32 %v231_v59, %v151_v56 }
 0x23d   :  { %v248_v0 = vmul.f32 1.4142135, %v244_v61  ;;  %v233_v1 = vpop.f32.mrf.mxu1 }
 0x23e   :  { %v245_v2 = vsel %vm237_vm5, %v228_v58, %v241_v62  ;;  %vm238_vm6 = vcmp.ge.f32.partialorder %v232_v63, 0.0  ;;  %v242_v3 = vmul.f32 0.2, %v232_v63  ;;  %v234_v4 = vadd.f32 %v233_v1, %v152_v60 }
 0x23f   :  { %252 = vst [vmem:[%s468_s5] sm:$0xff] %v248_v0  ;;  %v249_v5 = vmul.f32 1.4142135, %v245_v2 }
 0x240   :  { %v246_v6 = vsel %vm238_vm6, %v232_v63, %v242_v3  ;;  %vm239_vm7 = vcmp.ge.f32.partialorder %v234_v4, 0.0  ;;  %v243_v7 = vmul.f32 0.2, %v234_v4 }
 0x241   :  { %253 = vst [vmem:[%s468_s5 + $0x8] sm:$0xff] %v249_v5  ;;  %v250_v8 = vmul.f32 1.4142135, %v246_v6 }
 0x242   :  { %v247_v9 = vsel %vm239_vm7, %v234_v4, %v243_v7 }
 0x243   :  { %254 = vst [vmem:[%s468_s5 + $0x10] sm:$0xff] %v250_v8  ;;  %v251_v10 = vmul.f32 1.4142135, %v247_v9 }
 0x245   :  { %255 = vst [vmem:[%s468_s5 + $0x18] sm:$0xff] %v251_v10 }

</bundles_post_ra>
